<compile_context>
chip_gen: v7x
topology: tpu7x:2x2x1
jax: 0.10.0
libtpu: 0.0.40
codegen_flags: <defaults>
</compile_context>

<pallas_src>
import functools
import math

import jax
import jax.numpy as jnp
from jax.experimental import pallas as pl
from jax.experimental.pallas import tpu as pltpu

_SUBLANES = 8
# Widest-first lane candidates (lane-dense, wide last dims -> unmasked vst,
# fewer / larger DMA descriptors).
_LANE_CANDIDATES = (32768, 16384, 8192, 4096, 2048, 1024, 512, 256, 128)
# ~4 MiB per block (review: knee of the mem-bound copy roofline on v6e/v7x).
_TARGET_BLOCK_BYTES = 4 * 1024 * 1024
# Double-buffered in + out = 4x the tile live in VMEM (16 MiB) plus headroom.
# Explicitly above v5e's 16 MiB default scoped limit, well under v7x's 64 MiB.
_VMEM_LIMIT_BYTES = 40 * 1024 * 1024


# ----------------------------------------------------------------------------
# Primary path: zero-DMA aliased identity (the real "forward").
# ----------------------------------------------------------------------------
def _alias_identity_kernel(x_hbm_ref, o_hbm_ref):
    # Output aliases the input HBM buffer (input_output_aliases + donation):
    # the identity forward issues no DMA at all — no HBM read, no HBM write.
    del x_hbm_ref, o_hbm_ref


@functools.partial(jax.jit, donate_argnums=(0,))
def base_model_forward(x: jax.Array) -> jax.Array:
    """Identity forward for the abstract BaseModel (zero-copy pass-through)."""
    return pl.pallas_call(
        _alias_identity_kernel,
        out_shape=jax.ShapeDtypeStruct(x.shape, x.dtype),
        in_specs=[pl.BlockSpec(memory_space=pl.ANY)],
        out_specs=pl.BlockSpec(memory_space=pl.ANY),
        input_output_aliases={0: 0},
        cost_estimate=pl.CostEstimate(flops=0, transcendentals=0,
                                      bytes_accessed=0),
        compiler_params=pltpu.CompilerParams(has_side_effects=True),
    )(x)


# ----------------------------------------------------------------------------
# Secondary path: materializing identity copy (fresh output, input preserved).
# ----------------------------------------------------------------------------
def _copy_block_kernel(x_ref, o_ref):
    o_ref[...] = x_ref[...]


def _sublane_align(dtype) -> int:
    """Dtype-aware sublane alignment: 8 for 4B, 16 for bf16/fp16, 32 for int8."""
    itemsize = jnp.dtype(dtype).itemsize
    return max(_SUBLANES, (4 // itemsize) * _SUBLANES)


def _pick_lanes(n_elems: int, sub: int):
    """Widest lane width (multiple of 128) dividing n_elems, preferring rows % sub == 0."""
    widest = None
    for lanes in _LANE_CANDIDATES:
        if n_elems % lanes:
            continue
        if widest is None:
            widest = lanes
        if (n_elems // lanes) % sub == 0:
            return lanes
    return widest  # None if n_elems is not a multiple of 128


def _pick_tile_rows(rows: int, lanes: int, itemsize: int, sub: int) -> int:
    """Largest sublane-aligned tile <= ~4 MiB that divides rows exactly when possible."""
    if rows <= sub:
        return rows  # full row extent: always legal
    target = _TARGET_BLOCK_BYTES // (lanes * itemsize)
    target = max(sub, (target // sub) * sub)
    if rows <= target:
        return rows
    # Prefer an exact divisor so no grid step is a ragged / masked partial block.
    for cand in range(target, sub - 1, -sub):
        if rows % cand == 0:
            return cand
    return target  # no aligned divisor: Pallas masks the tail block


def _tiled_identity_copy(x2d: jax.Array) -> jax.Array:
    rows, lanes = x2d.shape
    itemsize = jnp.dtype(x2d.dtype).itemsize
    sub = _sublane_align(x2d.dtype)
    tile_r = _pick_tile_rows(rows, lanes, itemsize, sub)
    nbytes = rows * lanes * itemsize

    return pl.pallas_call(
        _copy_block_kernel,
        out_shape=jax.ShapeDtypeStruct((rows, lanes), x2d.dtype),
        grid=(pl.cdiv(rows, tile_r),),
        in_specs=[pl.BlockSpec((tile_r, lanes), lambda i: (i, 0))],
        out_specs=pl.BlockSpec((tile_r, lanes), lambda i: (i, 0)),
        cost_estimate=pl.CostEstimate(flops=0, transcendentals=0,
                                      bytes_accessed=2 * nbytes),
        compiler_params=pltpu.CompilerParams(
            dimension_semantics=("parallel",),
            vmem_limit_bytes=_VMEM_LIMIT_BYTES),
    )(x2d)


@jax.jit
def base_model_forward_copy(x: jax.Array) -> jax.Array:
    """Identity forward that writes a *fresh* output buffer (input preserved)."""
    orig_shape = x.shape
    n_elems = math.prod(orig_shape) if orig_shape else 1
    sub = _sublane_align(x.dtype)
    lanes = _pick_lanes(n_elems, sub)

    if lanes is None:
        # Element count not a multiple of 128: single full-array block (always
        # a legal BlockSpec) — no jnp.pad, no extra HBM passes.
        # TODO(synk): very large ragged tensors would need a masked-tail tiled copy.
        out = pl.pallas_call(
            _copy_block_kernel,
            out_shape=jax.ShapeDtypeStruct((1, n_elems), x.dtype),
        )(x.reshape(1, n_elems))
        return out.reshape(orig_shape)

    out2d = _tiled_identity_copy(x.reshape(n_elems // lanes, lanes))
    return out2d.reshape(orig_shape)


if __name__ == "__main__":
    key = jax.random.PRNGKey(0)
    # Small NCHW input consistent with a typical image-model forward.
    x = jax.random.normal(key, (2, 4, 16, 16), dtype=jnp.float32)
    x_host = jax.device_get(x)

    # Secondary path first (x is NOT donated here): real copy, fresh buffer.
    y_copy = jax.block_until_ready(base_model_forward_copy(x))
    assert y_copy.shape == tuple(x_host.shape) and y_copy.dtype == x_host.dtype
    assert bool(jnp.array_equal(y_copy, jnp.asarray(x_host)))

    # Primary path last: x is donated into the jitted forward and aliased to
    # the output, so the identity costs zero HBM traffic.
    y = jax.block_until_ready(base_model_forward(x))
    assert y.shape == tuple(x_host.shape) and y.dtype == x_host.dtype
    assert bool(jnp.array_equal(y, jnp.asarray(x_host)))

    # BaseModel.__str__ reports trainable parameters; the base class has none.
    trainable_params = 0
    assert trainable_params == 0

    print("KERNEL_OK")
</pallas_src>

<mosaic_0001>
module attributes {stable_mosaic.version = 11 : i64} {
  func.func @_copy_block_kernel(%arg0: i32, %arg1: memref<8x256xf32, #tpu.memory_space<vmem>>, %arg2: memref<8x256xf32, #tpu.memory_space<vmem>>) attributes {dimension_semantics = [#tpu.dimension_semantics<parallel>], iteration_bounds = array<i64: 1>, scalar_prefetch = 0 : i64, scratch_operands = 0 : i64, tpu.core_type = #tpu.core_type<tc>, window_params = [{transform_indices = @transform_0, window_bounds = array<i64: 8, 256>}, {transform_indices = @transform_1, window_bounds = array<i64: 8, 256>}]} {
    %c0 = arith.constant 0 : index
    %c0_0 = arith.constant 0 : index
    %0 = vector.load %arg1[%c0, %c0_0] : memref<8x256xf32, #tpu.memory_space<vmem>>, vector<8x256xf32>
    %c0_1 = arith.constant 0 : index
    %c0_2 = arith.constant 0 : index
    %1 = vector.load %arg2[%c0_1, %c0_2] : memref<8x256xf32, #tpu.memory_space<vmem>>, vector<8x256xf32>
    tpu.vector_store %arg2[%c0_1, %c0_2], %0 {strides = array<i32>} : memref<8x256xf32, #tpu.memory_space<vmem>>, vector<8x256xf32>,
    return
  }
  func.func @transform_0(%arg0: i32) -> (i32, i32) {
    %c0_i32 = arith.constant 0 : i32
    %c0_i32_0 = arith.constant 0 : i32
    return %arg0, %c0_i32 : i32, i32
  }
  func.func @transform_1(%arg0: i32) -> (i32, i32) {
    %c0_i32 = arith.constant 0 : i32
    %c0_i32_0 = arith.constant 0 : i32
    return %arg0, %c0_i32 : i32, i32
  }
}

</mosaic_0001>

<bundles_post_ra>
// kernel: base_model_forward_copy.1
= control target key start
LH: loop header
LB: loop body
LE: loop exit
PB: predicated region body
PF: predicated region fallthrough
CT: control target
= control target key end

     0   :  { %s38_s0 = inlined_call_operand.vmem [shape: f32[8,256], index: 0, kind: input, shape index: {}]   ;;  %s39_s1 = inlined_call_operand.vmem [shape: f32[8,256], index: 1, kind: output, shape index: {}]  }
   0x1   :  { %v8_v0 = vld [vmem:[%s38_s0] sm:$0xff]  ;;  %v9_v1 = vld [vmem:[%s38_s0 + $0x8] sm:$0xff] }
   0x2   :  { %10 = vst [vmem:[%s39_s1] sm:$0xff] %v8_v0  ;;  %11 = vst [vmem:[%s39_s1 + $0x8] sm:$0xff] %v9_v1 }

</bundles_post_ra>
